<compile_context>
chip_gen: v6e
topology: v6e:2x2x1
jax: 0.10.0
libtpu: 0.0.40
codegen_flags: <defaults>
</compile_context>

<pallas_src>
import jax
import jax.numpy as jnp
from jax.experimental import pallas as pl
from jax.experimental.pallas import tpu as pltpu


def _mean_pool_sum_kernel(h_ref, m_ref, o_ref, acc_ref):
    # h_ref: (1, TS, H) native dtype, m_ref: (1, TS, 1),
    # o_ref: (1, 1, H) f32, acc_ref: (1, 1, H) f32 scratch.
    s = pl.program_id(1)

    @pl.when(s == 0)
    def _():
        acc_ref[...] = jnp.zeros_like(acc_ref)

    h = h_ref[...].astype(jnp.float32)          # (1, TS, H)
    m = m_ref[...].astype(jnp.float32)          # (1, TS, 1)
    acc_ref[...] += jnp.sum(h * m, axis=1, keepdims=True)   # (1, 1, H)

    @pl.when(s == pl.num_programs(1) - 1)
    def _():
        o_ref[...] = acc_ref[...]


def _pick_seq_tile(S, H, itemsize, budget_bytes=4 * 1024 * 1024):
    """Largest S-tile whose (TS, H) block stays under ~4 MiB.

    Keeps double-buffered blocks well inside default scoped VMEM on
    v5e (16 MiB), v6e (32 MiB) and v7x (32 MiB scoped / 64 MiB physical).
    TS must divide S and be a multiple of 8 (sublane), unless TS == S.
    """
    if S * H * itemsize <= budget_bytes:
        return S
    target = max(8, budget_bytes // max(1, H * itemsize))
    ts = (min(target, S) // 8) * 8
    while ts >= 8:
        if S % ts == 0:
            return ts
        ts -= 8
    return S  # fallback: S has no suitable divisor, take the whole axis


def mean_pooling(last_hidden_state, attention_mask):
    """Pallas implementation of MeanPooling.forward.

    last_hidden_state: [B, S, H] float (bf16/f32, streamed in native dtype)
    attention_mask:    [B, S]    int or float
    returns:           [B, H]    float32
    """
    B, S, H = last_hidden_state.shape
    itemsize = jnp.dtype(last_hidden_state.dtype).itemsize
    ts = _pick_seq_tile(S, H, itemsize)
    n_s = S // ts

    # Glue for unsqueeze(-1); the .float() cast happens per-tile in the kernel.
    mask3 = attention_mask.reshape(B, S, 1)

    sums = pl.pallas_call(
        _mean_pool_sum_kernel,
        out_shape=jax.ShapeDtypeStruct((B, 1, H), jnp.float32),
        grid_spec=pltpu.PrefetchScalarGridSpec(
            num_scalar_prefetch=0,
            grid=(B, n_s),
            in_specs=[
                pl.BlockSpec((1, ts, H), lambda b, s: (b, s, 0)),
                pl.BlockSpec((1, ts, 1), lambda b, s: (b, s, 0)),
            ],
            out_specs=pl.BlockSpec((1, 1, H), lambda b, s: (b, 0, 0)),
            scratch_shapes=[pltpu.VMEM((1, 1, H), jnp.float32)],
        ),
        compiler_params=pltpu.CompilerParams(
            dimension_semantics=("parallel", "arbitrary"),
        ),
    )(last_hidden_state, mask3)

    # Hoisted denominator: torch.clamp(sum_mask, min=1e-9) and the divide are
    # tiny [B]/[B,H] ops; let XLA handle them.
    denom = jnp.maximum(
        jnp.sum(attention_mask.astype(jnp.float32), axis=1, keepdims=True), 1e-9
    )  # (B, 1)
    return sums.reshape(B, H) / denom


def _reference(last_hidden_state, attention_mask):
    m = attention_mask.astype(jnp.float32)[..., None]
    s = jnp.sum(last_hidden_state.astype(jnp.float32) * m, axis=1)
    d = jnp.maximum(jnp.sum(m, axis=1), 1e-9)
    return s / d


if __name__ == "__main__":
    key = jax.random.PRNGKey(0)
    k1, k2 = jax.random.split(key)

    B, S, H = 2, 8, 32
    last_hidden_state = jax.random.normal(k1, (B, S, H), dtype=jnp.float32)
    # Binary attention mask (int32), with some padding positions masked out.
    attention_mask = (jax.random.uniform(k2, (B, S)) > 0.3).astype(jnp.int32)

    out = mean_pooling(last_hidden_state, attention_mask)
    out = jax.block_until_ready(out)

    ref = _reference(last_hidden_state, attention_mask)
    assert out.shape == (B, H)
    assert jnp.allclose(out, ref, atol=1e-5, rtol=1e-5)

    print("KERNEL_OK")
</pallas_src>

<mosaic_0001>
module attributes {stable_mosaic.version = 11 : i64} {
  func.func @_mean_pool_sum_kernel(%arg0: i32, %arg1: i32, %arg2: memref<1x8x32xf32, #tpu.memory_space<vmem>>, %arg3: memref<1x8x1xi32, #tpu.memory_space<vmem>>, %arg4: memref<1x1x32xf32, #tpu.memory_space<vmem>>, %arg5: memref<1x1x32xf32, #tpu.memory_space<vmem>>) attributes {dimension_semantics = [#tpu.dimension_semantics<parallel>, #tpu.dimension_semantics<arbitrary>], iteration_bounds = array<i64: 2, 1>, scalar_prefetch = 0 : i64, scratch_operands = 1 : i64, tpu.core_type = #tpu.core_type<tc>, window_params = [{transform_indices = @transform_0, window_bounds = array<i64: 1, 8, 32>}, {transform_indices = @transform_1, window_bounds = array<i64: 1, 8, 1>}, {transform_indices = @transform_2, window_bounds = array<i64: 1, 1, 32>}]} {
    %c0_i32 = arith.constant 0 : i32
    %0 = arith.cmpi eq, %arg1, %c0_i32 : i32
    %1 = arith.extui %0 : i1 to i32
    %c0_i32_0 = arith.constant 0 : i32
    %2 = arith.cmpi ne, %1, %c0_i32_0 : i32
    scf.if %2 {
      %cst_14 = arith.constant 0.000000e+00 : f32
      %16 = vector.broadcast %cst_14 : f32 to vector<1x1x32xf32>
      %c0_15 = arith.constant 0 : index
      %c0_16 = arith.constant 0 : index
      %c0_17 = arith.constant 0 : index
      %17 = vector.load %arg5[%c0_15, %c0_16, %c0_17] : memref<1x1x32xf32, #tpu.memory_space<vmem>>, vector<1x1x32xf32>
      tpu.vector_store %arg5[%c0_15, %c0_16, %c0_17], %16 {strides = array<i32>} : memref<1x1x32xf32, #tpu.memory_space<vmem>>, vector<1x1x32xf32>,
    } else {
    }
    %c0 = arith.constant 0 : index
    %c0_1 = arith.constant 0 : index
    %c0_2 = arith.constant 0 : index
    %3 = vector.load %arg2[%c0, %c0_1, %c0_2] : memref<1x8x32xf32, #tpu.memory_space<vmem>>, vector<1x8x32xf32>
    %c0_3 = arith.constant 0 : index
    %c0_4 = arith.constant 0 : index
    %c0_5 = arith.constant 0 : index
    %4 = vector.load %arg3[%c0_3, %c0_4, %c0_5] : memref<1x8x1xi32, #tpu.memory_space<vmem>>, vector<1x8x1xi32>
    %5 = arith.sitofp %4 : vector<1x8x1xi32> to vector<1x8x1xf32>
    %c0_6 = arith.constant 0 : index
    %c0_7 = arith.constant 0 : index
    %c0_8 = arith.constant 0 : index
    %6 = vector.load %arg5[%c0_6, %c0_7, %c0_8] : memref<1x1x32xf32, #tpu.memory_space<vmem>>, vector<1x1x32xf32>
    %7 = vector.broadcast %5 : vector<1x8x1xf32> to vector<1x8x32xf32>
    %8 = arith.mulf %3, %7 : vector<1x8x32xf32>
    %cst = arith.constant dense<0.000000e+00> : vector<1x32xf32>
    %9 = vector.multi_reduction <add>, %8, %cst [1] : vector<1x8x32xf32> to vector<1x32xf32>
    %10 = vector.shape_cast %9 : vector<1x32xf32> to vector<1x1x32xf32>
    %11 = arith.addf %6, %10 : vector<1x1x32xf32>
    %c0_9 = arith.constant 0 : index
    %c0_10 = arith.constant 0 : index
    %c0_11 = arith.constant 0 : index
    %12 = vector.load %arg5[%c0_9, %c0_10, %c0_11] : memref<1x1x32xf32, #tpu.memory_space<vmem>>, vector<1x1x32xf32>
    tpu.vector_store %arg5[%c0_9, %c0_10, %c0_11], %11 {strides = array<i32>} : memref<1x1x32xf32, #tpu.memory_space<vmem>>, vector<1x1x32xf32>,
    %c0_i32_12 = arith.constant 0 : i32
    %13 = arith.cmpi eq, %arg1, %c0_i32_12 : i32
    %14 = arith.extui %13 : i1 to i32
    %c0_i32_13 = arith.constant 0 : i32
    %15 = arith.cmpi ne, %14, %c0_i32_13 : i32
    scf.if %15 {
      %c0_14 = arith.constant 0 : index
      %c0_15 = arith.constant 0 : index
      %c0_16 = arith.constant 0 : index
      %16 = vector.load %arg5[%c0_14, %c0_15, %c0_16] : memref<1x1x32xf32, #tpu.memory_space<vmem>>, vector<1x1x32xf32>
      %c0_17 = arith.constant 0 : index
      %c0_18 = arith.constant 0 : index
      %c0_19 = arith.constant 0 : index
      %17 = vector.load %arg4[%c0_17, %c0_18, %c0_19] : memref<1x1x32xf32, #tpu.memory_space<vmem>>, vector<1x1x32xf32>
      tpu.vector_store %arg4[%c0_17, %c0_18, %c0_19], %16 {strides = array<i32>} : memref<1x1x32xf32, #tpu.memory_space<vmem>>, vector<1x1x32xf32>,
    } else {
    }
    return
  }
  func.func @transform_0(%arg0: i32, %arg1: i32) -> (i32, i32, i32) {
    %c0_i32 = arith.constant 0 : i32
    %c0_i32_0 = arith.constant 0 : i32
    return %arg0, %arg1, %c0_i32 : i32, i32, i32
  }
  func.func @transform_1(%arg0: i32, %arg1: i32) -> (i32, i32, i32) {
    %c0_i32 = arith.constant 0 : i32
    %c0_i32_0 = arith.constant 0 : i32
    return %arg0, %arg1, %c0_i32 : i32, i32, i32
  }
  func.func @transform_2(%arg0: i32, %arg1: i32) -> (i32, i32, i32) {
    %c0_i32 = arith.constant 0 : i32
    %c0_i32_0 = arith.constant 0 : i32
    %c0_i32_1 = arith.constant 0 : i32
    return %arg0, %c0_i32, %c0_i32_0 : i32, i32, i32
  }
}

</mosaic_0001>

<bundles_post_ra>
// kernel: tpu_custom_call.1
= control target key start
LH: loop header
LB: loop body
LE: loop exit
PB: predicated region body
PF: predicated region fallthrough
CT: control target
= control target key end

     0   :  { %7 = vsyncpa [#allocation4], 0  ;;  %s590_s0 = inlined_call_operand.vmem [shape: f32[2,8,32], index: 0, kind: input, shape index: {}]   ;;  %s591_s1 = inlined_call_operand.vmem [shape: s32[2,8,1], index: 1, kind: input, shape index: {}]   ;;  %s592_s2 = inlined_call_operand.hbm [shape: f32[2,1,32], index: 2, kind: output, shape index: {}]  }
   0x1   :  { %9 = vsyncpa [#allocation4 + $0x1], 0  ;;  %s479_s9 = smov 0   ;;  %s481_s10 = smov 0  }
   0x2   :  { %s483_s11 = smov 0   ;;  %s485_s12 = smov 0  }
   0x3   :  { %s487_s13 = smov 0   ;;  %s489_s14 = smov 0  }
   0x4 LB: > { %s315_s15 = sadd.s32 4294967295, %s459_s14   ;;  %s316_s16 = sadd.s32 4294967294, %s459_s14   ;;  %s459_s14 = sphi %s489_s14, %s15_s14   ;;  %s455_s13 = sphi %s487_s13, %s599_s13   ;;  %s451_s12 = sphi %s485_s12, %s598_s12   ;;  %s447_s11 = sphi %s483_s11, %s597_s11   ;;  %s443_s10 = sphi %s481_s10, %s596_s10   ;;  %s439_s9 = sphi %s479_s9, %s595_s9  }
   0x5   : > { %s27_s17 = sadd.s32 1, %s455_s13  ;;  %s90_s18 = sadd.s32 1, %s447_s11 }
   0x6   : > { %p29_p0 = scmp.ge.s32.totalorder %s27_s17, 2  ;;  %p100_p1 = scmp.ne.s32.totalorder %s447_s11, %s443_s10 }
   0x7   : > { %p101_p2 = scmp.eq.s32.totalorder %s315_s15, 1  ;;  %p106_p3 = scmp.ne.s32.totalorder %s443_s10, %s439_s9 }
   0x8   : > { %s601_s17 = smov (%p29_p0, %s27_s17), 0  ;;  %p107_p5 = scmp.eq.s32.totalorder %s316_s16, 1 }
   0x9   : > { %p519_p4 = por %p101_p2, %p100_p1  ;;  %s87_s20 = ssub.s32 %s455_s13, %s601_s17 }
   0xa   : > { %p319_p6 = scmp.ge.s32.totalorder %s459_s14, 1  ;;  %p88_p7 = scmp.eq.s32.totalorder %s87_s20, 0 }
   0xb   : > { %p526_p8 = por %p107_p5, %p106_p3  ;;  %p145_p9 = scmp.lt.s32.totalorder %s459_s14, 3 }
   0xc   : > { %s532_s22 = scalar_select %p88_p7, %s447_s11, %s90_s18  }
   0xd   : > { %p146_p10 = pnand %p319_p6, %p145_p9 }
   0xe   : > { %p175_p11 = scmp.lt.s32.totalorder (!%p146_p10), %s451_s12, 1  ;;  %s173_s3 = sand.u32 (!%p146_p10), 1, %s443_s10  }
   0xf   : > { %149 = sbr.rel (%p146_p10) target bundleno = 189 (0xbd), region = 28  ;;  %s322_s4 = sshll.u32 (!%p146_p10), %s451_s12, 4 }
  0x10   : > { %s174_s5 = scalar_lea.vmem (!%p146_p10), [#allocation3], %s173_s3  ;;  %s549_s15 = scalar_lea.hbm (!%p146_p10), %s592_s2, %s322_s4 }
  0x11   : > { %s234_s6 = sshll.u32 (!%p146_p10), %s174_s5, 4  ;;  %s222_s16 = scalar_lea.sflag (!%p146_p10), [#allocation4], %s173_s3  ;;  %s235_s6 = int_to_ptr.vmem [resolvable:$true] %s234_s6 }
  0x12   : > { %s383_s18 = scalar_lea.vmem (!%p146_p10), %s235_s6, 16  ;;  %s463_s20 = smov (!%p146_p10), [#allocation3]  }
  0x13   : > { %p384_p12 = scmp.ne.s32.totalorder (!%p146_p10), %s235_s6, %s383_s18 }
  0x14   : > { %v461_v0 = vmov 0   ;;  %s176_s23 = scalar_select %p175_p11, %s451_s12, 1  ;;  %vm193_vm0 = vcmask 253952   ;;  %v462_v3 = vmov 0.0   ;;  %vm205_vm1 = vcmask 261120  }
  0x15   : > { %382 = vset.pattern.permute.xlu0 %v461_v0  ;;  %194 = vst.msk [vmem:[#allocation2] sm:$0x1] %vm193_vm0, %v462_v3  ;;  %p385_p13 = pnand %p384_p12, %p519_p4 }
  0x16   : > { %s320_s24 = sshll.u32 %s176_s23, 3  ;;  %s387_s23 = sshll.u32 %s463_s20, 4  ;;  %s388_s23 = int_to_ptr.vmem [resolvable:$false] %s387_s23 }
  0x17   : > { %s188_s27 = scalar_lea.vmem %s591_s1, %s320_s24  ;;  %s181_s30 = scalar_lea.vmem %s590_s0, %s320_s24 }
  0x18   : > { %v196_v1 = vld [vmem:[%s188_s27] sm:$0xff]  ;;  %p386_p0 = pneg %p385_p13  ;;  %s389_s12 = scalar_lea.vmem %s388_s23, 32 }
  0x19   : > { %v197_v2 = vcvt.s32.f32 %v196_v1  ;;  %v195_v4 = vld [vmem:[%s181_s30] sm:$0xff]  ;;  %p390_p1 = scmp.lt.s32.totalorder %s235_s6, %s388_s23  ;;  %p391_p2 = scmp.lt.s32.totalorder %s389_s12, %s383_s18 }
  0x1b   : > { %201 = vperm.xlu0 %382, %v197_v2   ;;  %p392_p3 = por %p391_p2, %p390_p1 }
  0x1c   : > { %v198_v13 = vld [vmem:[#allocation2] sm:$0x1] }
  0x1d   : > { %p393_p5 = pnand %p392_p3, %p386_p0 }
  0x96   : > { %v202_v5 = vpop.permute.xlu0 %201 }
  0x97   : > { %v204_v6 = vmul.f32 %v202_v5, %v195_v4 }
  0x99   : > { %v206_v7 = vsel %vm205_vm1, %v204_v6, 0.0 }
  0x9a   : > { %v207_v8 = vrot.slane %v206_v7, 4 }
  0x9c   : > { %v208_v9 = vadd.f32 %v207_v8, %v206_v7 }
  0x9e   : > { %v209_v10 = vrot.slane %v208_v9, 2 }
  0xa0   : > { %v210_v11 = vadd.f32 %v209_v10, %v208_v9 }
  0xa2   : > { %v211_v12 = vrot.slane %v210_v11, 1 }
  0xa4   : > { %v212_v14 = vadd.f32 %v211_v12, %v210_v11 }
  0xa6   : > { %v213_v15 = vadd.f32 %v212_v14, %v198_v13 }
  0xa8   : > { %215 = vst.msk [vmem:[#allocation2] sm:$0x1] %vm193_vm0, %v213_v15 }
  0xaf   : > { %v219_v16 = vld [vmem:[#allocation2] sm:$0x1] }
  0xb0   : > { %220 = vst.msk [vmem:[%s174_s5] sm:$0x1] %vm193_vm0, %v219_v16 }
  0xb1   : > { %396 = shalt.err (!%p393_p5)
}
  0xb2   : > { %s397_s24 = scalar_lea.hbm %s549_s15, 16  ;;  %s401_s27 = scalar_lea.hbm %s592_s2, 32 }
  0xb3   : > { %p398_p6 = scmp.ne.s32.totalorder %s549_s15, %s397_s24  ;;  %p402_p10 = scmp.lt.s32.totalorder %s549_s15, %s592_s2 }
  0xb4   : > { %p403_p11 = scmp.lt.s32.totalorder %s401_s27, %s397_s24 }
  0xb5   : > { %p399_p7 = pnand %p398_p6, %p519_p4 }
  0xb6   : > { %p404_p12 = por %p403_p11, %p402_p10 }
  0xb7   : > { %p400_p9 = pneg %p399_p7 }
  0xb9   : > { %p405_p13 = pnand %p404_p12, %p400_p9 }
  0xbb   : > { %408 = shalt.err (!%p405_p13)
}
  0xbc   : > { %325 = dma.vmem_to_hbm [thread:$0]  (%p519_p4), %s235_s6, 16, %s549_s15, %s222_s16  }
  0xbd PF: > { %p331_p0 = scmp.ge.s32.totalorder %s459_s14, 2  ;;  %s246_s30 = sand.u32 1, %s439_s9  }
  0xbe   : > { %s247_s3 = scalar_lea.sflag [#allocation4], %s246_s30 }
  0xbf   : > { %p328_p1 = pnand %p331_p0, %p526_p8 }
  0xc1   : > { %p329_p2 = pneg %p328_p1 }
  0xc3   : > { %434 = dma.done.wait (%p329_p2), %s247_s3, 16  }
  0xc4   : > { %436 = vsyncadd (%p329_p2), %s247_s3, 4294967280  ;;  %s15_s14 = sadd.s32 1, %s459_s14   ;;  %s595_s9 = smov %s443_s10 }
  0xc5   : > { %p12_p3 = scmp.ge.s32.totalorder %s15_s14, 4   ;;  %s596_s10 = smov %s447_s11 }
  0xc6   : > { %s597_s11 = smov %s532_s22  ;;  %s598_s12 = smov %s455_s13 }
  0xc7   : > { %s599_s13 = smov %s601_s17  ;;  %14 = sbr.rel (!%p12_p3) target bundleno = 4 (0x4), region = 74 }
  0xcc   :  { %251 = vsyncpa [#allocation4], 1 }
  0xcd   :  { %253 = vsyncpa [#allocation4 + $0x1], 1 }

</bundles_post_ra>
